<compile_context>
chip_gen: v7x
topology: tpu7x:2x2x1
jax: 0.10.0
libtpu: 0.0.40
codegen_flags: <defaults>
</compile_context>

<pallas_src>
import jax
import jax.numpy as jnp
from jax.experimental import pallas as pl
from jax.experimental.pallas import tpu as pltpu


def _cdiv(a: int, b: int) -> int:
    return -(-a // b)


def _round_up(a: int, b: int) -> int:
    return _cdiv(a, b) * b


def _make_channel_pool_kernel(inv_c: float):
    def kernel(x_ref, o_ref):
        # x_ref: (C, tile_hw) block in VMEM; o_ref: (2, tile_hw).
        x = x_ref[...]
        o_ref[0:1, :] = jnp.max(x, axis=0, keepdims=True).astype(o_ref.dtype)
        # f32 accumulation without materializing an f32 copy of the block.
        ch_sum = jnp.sum(x, axis=0, keepdims=True, dtype=jnp.float32)
        o_ref[1:2, :] = (ch_sum * inv_c).astype(o_ref.dtype)

    return kernel


def _vmem_budget() -> tuple[int, int]:
    """Per-generation (vmem_limit_bytes, double-buffered-input-block budget)."""
    try:
        cap = int(pltpu.get_tpu_info().vmem_capacity_bytes)
    except Exception:
        cap = 64 * 1024 * 1024  # conservative: v7x physical VMEM per TC
    # Scoped limit: 3/4 of physical, capped at 96 MiB (v5e/v6e have 128 MiB,
    # v7x only 64 MiB -> 48 MiB limit).  Leaves headroom for outputs/scratch.
    vmem_limit = min(cap * 3 // 4, 96 * 1024 * 1024)
    # The two pipelined input buffers get at most half of the scoped limit
    # (>= ~12 MiB per block on v7x, ~24 MiB on v5e/v6e when shapes allow).
    block_budget = vmem_limit // 2
    return vmem_limit, block_budget


def _pick_tile_hw(hw: int, c: int, itemsize: int, block_budget_bytes: int,
                  min_spatial_tiles: int) -> int:
    """Largest lane-dense (multiple-of-128) tile such that the double-buffered
    (C, tile) input block stays under `block_budget_bytes`, while keeping at
    least `min_spatial_tiles` spatial grid steps (megacore) when possible."""
    hw_padded = _round_up(hw, 128)
    by_budget = (block_budget_bytes // max(1, 2 * c * itemsize)) // 128 * 128
    by_split = _round_up(_cdiv(hw, max(1, min_spatial_tiles)), 128)
    tile = min(hw_padded, max(128, by_budget), by_split)
    return max(128, tile)


def channel_pool(x: jax.Array) -> jax.Array:
    """ChannelPool forward. x: (N, C, H, W) -> (N, 2, H, W)."""
    N, C, H, W = x.shape
    HW = H * W
    x_flat = x.reshape(N, C, HW)  # contiguous view; lane-dense last axis

    vmem_limit, block_budget = _vmem_budget()
    # If the batch axis already gives >= 2 grid steps, don't force a spatial
    # split; otherwise keep >= 2 spatial tiles so both v7x TCs have work.
    min_spatial_tiles = 1 if N >= 2 else 2
    tile_hw = _pick_tile_hw(HW, C, x.dtype.itemsize, block_budget,
                            min_spatial_tiles)
    grid = (N, _cdiv(HW, tile_hw))

    cost = pl.CostEstimate(
        flops=2 * N * C * HW,
        transcendentals=0,
        bytes_accessed=N * (C + 2) * HW * x.dtype.itemsize,
    )

    out_flat = pl.pallas_call(
        _make_channel_pool_kernel(1.0 / C),
        out_shape=jax.ShapeDtypeStruct((N, 2, HW), x.dtype),
        grid_spec=pltpu.PrefetchScalarGridSpec(
            num_scalar_prefetch=0,
            grid=grid,
            in_specs=[
                pl.BlockSpec((None, C, tile_hw), lambda n, j: (n, 0, j)),
            ],
            out_specs=pl.BlockSpec((None, 2, tile_hw), lambda n, j: (n, 0, j)),
        ),
        compiler_params=pltpu.CompilerParams(
            dimension_semantics=("parallel", "parallel"),
            vmem_limit_bytes=vmem_limit,
        ),
        cost_estimate=cost,
    )(x_flat)

    return out_flat.reshape(N, 2, H, W)


def channel_pool_ref(x: jax.Array) -> jax.Array:
    """Pure-JAX reference matching the PyTorch semantics."""
    return jnp.concatenate(
        [jnp.max(x, axis=1, keepdims=True), jnp.mean(x, axis=1, keepdims=True)],
        axis=1,
    )


if __name__ == "__main__":
    key = jax.random.PRNGKey(0)
    # Small NCHW input consistent with the module's expectations.
    x = jax.random.normal(key, (2, 4, 16, 16), dtype=jnp.float32)

    out = channel_pool(x)
    jax.block_until_ready(out)

    ref = channel_pool_ref(x)
    assert out.shape == (2, 2, 16, 16), out.shape
    assert out.dtype == x.dtype, out.dtype
    assert jnp.allclose(out, ref, atol=1e-6, rtol=1e-6), "mismatch vs reference"

    # Ragged-edge + small-batch path: HW not a multiple of 128, N == 1.
    x2 = jax.random.normal(jax.random.PRNGKey(1), (1, 6, 10, 13), dtype=jnp.float32)
    out2 = channel_pool(x2)
    jax.block_until_ready(out2)
    assert jnp.allclose(out2, channel_pool_ref(x2), atol=1e-6, rtol=1e-6), \
        "mismatch vs reference (ragged HW)"

    print("KERNEL_OK")
</pallas_src>

<mosaic_0001>
module attributes {stable_mosaic.version = 11 : i64} {
  func.func @kernel(%arg0: i32, %arg1: i32, %arg2: memref<1x4x256xf32, #tpu.memory_space<vmem>>, %arg3: memref<1x2x256xf32, #tpu.memory_space<vmem>>) attributes {dimension_semantics = [#tpu.dimension_semantics<parallel>, #tpu.dimension_semantics<parallel>], iteration_bounds = array<i64: 2, 1>, scalar_prefetch = 0 : i64, scratch_operands = 0 : i64, tpu.core_type = #tpu.core_type<tc>, window_params = [{transform_indices = @transform_0, window_bounds = array<i64: 1, 4, 256>}, {transform_indices = @transform_1, window_bounds = array<i64: 1, 2, 256>}]} {
    %c0 = arith.constant 0 : index
    %c0_0 = arith.constant 0 : index
    %c0_1 = arith.constant 0 : index
    %0 = vector.load %arg2[%c0, %c0_0, %c0_1] : memref<1x4x256xf32, #tpu.memory_space<vmem>>, vector<1x4x256xf32>
    %1 = vector.shape_cast %0 : vector<1x4x256xf32> to vector<4x256xf32>
    %cst = arith.constant dense<0xFF800000> : vector<256xf32>
    %2 = vector.multi_reduction <maximumf>, %1, %cst [0] : vector<4x256xf32> to vector<256xf32>
    %3 = vector.shape_cast %2 : vector<256xf32> to vector<1x256xf32>
    %c0_2 = arith.constant 0 : index
    %c0_3 = arith.constant 0 : index
    %c0_4 = arith.constant 0 : index
    %4 = vector.load %arg3[%c0_2, %c0_3, %c0_4] : memref<1x2x256xf32, #tpu.memory_space<vmem>>, vector<1x1x256xf32>
    %5 = vector.shape_cast %4 : vector<1x1x256xf32> to vector<1x256xf32>
    %6 = vector.shape_cast %3 : vector<1x256xf32> to vector<1x1x256xf32>
    tpu.vector_store %arg3[%c0_2, %c0_3, %c0_4], %6 {strides = array<i32>} : memref<1x2x256xf32, #tpu.memory_space<vmem>>, vector<1x1x256xf32>,
    %cst_5 = arith.constant dense<0.000000e+00> : vector<256xf32>
    %7 = vector.multi_reduction <add>, %1, %cst_5 [0] : vector<4x256xf32> to vector<256xf32>
    %8 = vector.shape_cast %7 : vector<256xf32> to vector<1x256xf32>
    %cst_6 = arith.constant 2.500000e-01 : f32
    %9 = vector.broadcast %cst_6 : f32 to vector<1x256xf32>
    %10 = arith.mulf %8, %9 : vector<1x256xf32>
    %c0_7 = arith.constant 0 : index
    %c1 = arith.constant 1 : index
    %c0_8 = arith.constant 0 : index
    %11 = vector.load %arg3[%c0_7, %c1, %c0_8] : memref<1x2x256xf32, #tpu.memory_space<vmem>>, vector<1x1x256xf32>
    %12 = vector.shape_cast %11 : vector<1x1x256xf32> to vector<1x256xf32>
    %13 = vector.shape_cast %10 : vector<1x256xf32> to vector<1x1x256xf32>
    tpu.vector_store %arg3[%c0_7, %c1, %c0_8], %13 {strides = array<i32>} : memref<1x2x256xf32, #tpu.memory_space<vmem>>, vector<1x1x256xf32>,
    return
  }
  func.func @transform_0(%arg0: i32, %arg1: i32) -> (i32, i32, i32) {
    %c0_i32 = arith.constant 0 : i32
    %c0_i32_0 = arith.constant 0 : i32
    return %arg0, %c0_i32, %arg1 : i32, i32, i32
  }
  func.func @transform_1(%arg0: i32, %arg1: i32) -> (i32, i32, i32) {
    %c0_i32 = arith.constant 0 : i32
    %c0_i32_0 = arith.constant 0 : i32
    return %arg0, %c0_i32, %arg1 : i32, i32, i32
  }
}

</mosaic_0001>

<bundles_post_ra>
// kernel: tpu_custom_call.1
= control target key start
LH: loop header
LB: loop body
LE: loop exit
PB: predicated region body
PF: predicated region fallthrough
CT: control target
= control target key end

     0   :  { %6 = vsyncpa [#allocation3], 0  ;;  %s714_s0 = inlined_call_operand.hbm [shape: f32[2,4,256], index: 0, kind: input, shape index: {}]   ;;  %s715_s1 = inlined_call_operand.hbm [shape: f32[2,2,256], index: 1, kind: output, shape index: {}]  }
   0x1   :  { %8 = vsyncpa [#allocation3 + $0x1], 0 }
   0x2   :  { %9 = vsyncpa [#allocation4], 0 }
   0x3   :  { %11 = vsyncpa [#allocation4 + $0x1], 0  ;;  %s541_s6 = smov 0   ;;  %s543_s7 = smov 0  }
   0x4   :  { %s545_s8 = smov 0   ;;  %s547_s9 = smov 0  }
   0x5   :  { %s549_s10 = smov 0   ;;  %s551_s11 = smov 0  }
   0x6 LB: > { %s332_s12 = sadd.s32 4294967295, %s526_s11   ;;  %s333_s13 = sadd.s32 4294967294, %s526_s11   ;;  %s526_s11 = sphi %s551_s11, %s17_s11   ;;  %s522_s10 = sphi %s549_s10, %s731_s10   ;;  %s518_s9 = sphi %s547_s9, %s730_s9   ;;  %s514_s8 = sphi %s545_s8, %s729_s8   ;;  %s510_s7 = sphi %s543_s7, %s728_s7   ;;  %s506_s6 = sphi %s541_s6, %s727_s6  }
   0x7   : > { %s29_s14 = sadd.s32 1, %s522_s10  ;;  %s38_s15 = sadd.s32 1, %s514_s8 }
   0x8   : > { %p31_p0 = scmp.ge.s32.totalorder %s29_s14, 2  ;;  %p45_p1 = scmp.ne.s32.totalorder %s514_s8, %s510_s7 }
   0x9   : > { %p46_p2 = scmp.eq.s32.totalorder %s526_s11, 0  ;;  %p51_p3 = scmp.ne.s32.totalorder %s510_s7, %s506_s6 }
   0xa   : > { %s733_s14 = smov (%p31_p0, %s29_s14), 0  ;;  %p52_p5 = scmp.eq.s32.totalorder %s332_s12, 0 }
   0xb   : > { %p582_p4 = por %p46_p2, %p45_p1  ;;  %s33_s17 = ssub.s32 %s522_s10, %s733_s14 }
   0xc   : > { %p77_p6 = scmp.eq.s32.totalorder %s332_s12, 1  ;;  %p36_p7 = scmp.eq.s32.totalorder %s33_s17, 0 }
   0xd   : > { %p588_p8 = por %p52_p5, %p51_p3  ;;  %p83_p10 = scmp.eq.s32.totalorder %s333_s13, 1 }
   0xe   : > { %p592_p9 = por %p77_p6, %p45_p1  ;;  %p362_p13 = scmp.lt.s32.totalorder %s526_s11, 2 }
   0xf   : > { %s597_s20 = scalar_select %p36_p7, %s514_s8, %s38_s15  }
  0x10   : > { %s719_s19 = scalar_select %p592_p9, 1, 0 }
  0x11   : > { %p599_p11 = por %p83_p10, %p51_p3  ;;  %s103_s22 = sand.u32 1, %s514_s8  }
  0x12   : > { %s336_s23 = sshll.u32 %s103_s22, 3  ;;  %s348_s24 = sshll.u32 %s522_s10, 7 }
  0x13   : > { %s720_s21 = scalar_select %p599_p11, 1, 0 }
  0x14   : > { %s610_s27 = scalar_lea.hbm %s714_s0, %s348_s24  ;;  %s107_s28 = scalar_lea.vmem [#allocation2], %s336_s23 }
  0x15   : > { %s117_s29 = sshll.u32 %s107_s28, 4  ;;  %p616_p0 = pnand %p362_p13, %p582_p4  ;;  %s612_s29 = int_to_ptr.vmem [resolvable:$true] %s117_s29 }
  0x16   : > { %s104_s2 = scalar_lea.sflag [#allocation3], %s103_s22  ;;  %s414_s3 = scalar_lea.hbm %s610_s27, 128 }
  0x17   : > { %p415_p3 = scmp.ne.s32.totalorder %s610_s27, %s414_s3  ;;  %p416_p5 = pneg %p616_p0 }
  0x18   : > { %s419_s12 = scalar_lea.hbm %s714_s0, 256  ;;  %p420_p4 = scmp.lt.u32.totalorder %s610_s27, %s714_s0 }
  0x19   : > { %p417_p6 = pnand %p416_p5, %p415_p3  ;;  %p421_p10 = scmp.lt.u32.totalorder %s419_s12, %s414_s3 }
  0x1a   : > { %p423_p12 = scmp.lt.u32.totalorder %s414_s3, %s610_s27 }
  0x1b   : > { %p418_p7 = pneg %p417_p6  ;;  %p422_p13 = por %p421_p10, %p420_p4 }
  0x1d   : > { %p424_p1 = por %p423_p12, %p422_p13 }
  0x1f   : > { %p425_p2 = pnand %p424_p1, %p418_p7 }
  0x21   : > { %428 = shalt.err (!%p425_p2)
}
  0x22   : > { %s429_s16 = scalar_lea.vmem %s612_s29, 128  ;;  %s528_s17 = smov [#allocation2]  }
  0x23   : > { %p430_p3 = scmp.ne.s32.totalorder %s612_s29, %s429_s16  ;;  %s434_s22 = sshll.u32 %s528_s17, 4  ;;  %s435_s22 = int_to_ptr.vmem [resolvable:$false] %s434_s22 }
  0x24   : > { %s436_s23 = scalar_lea.vmem %s435_s22, 256  ;;  %p437_p9 = scmp.lt.s32.totalorder %s612_s29, %s435_s22 }
  0x25   : > { %p432_p6 = pnand %p430_p3, %p416_p5  ;;  %p438_p4 = scmp.lt.s32.totalorder %s436_s23, %s429_s16 }
  0x27   : > { %p433_p11 = pneg %p432_p6  ;;  %p439_p10 = por %p438_p4, %p437_p9 }
  0x29   : > { %p440_p12 = pnand %p439_p10, %p433_p11 }
  0x2b   : > { %443 = shalt.err (!%p440_p12)
}
  0x2c   : > { %357 = dma.hbm_to_vmem [thread:$0]  (!%p616_p0), %s610_s27, 128, %s612_s29, %s104_s2  }
  0x2d   : > { %p722_p1 = scmp.lt.s32.totalorder %s526_s11, 3  ;;  %p723_p2 = scmp.ge.s32.totalorder %s526_s11, 1 }
  0x2f   : > { %p123_p5 = pnand %p723_p2, %p722_p1 }
  0x30   : > { %s652_s24 = sand.u32 (!%p123_p5), 1, %s510_s7  }
  0x31   : > { %126 = sbr.rel (%p123_p5) target bundleno = 95 (0x5f), region = 24  ;;  %s340_s25 = sshll.u32 (!%p123_p5), %s652_s24, 3 }
  0x32   : > { %s129_s26 = scalar_lea.sflag (!%p123_p5), [#allocation3], %s652_s24  ;;  %s132_s28 = scalar_lea.vmem (!%p123_p5), [#allocation2], %s340_s25 }
  0x38   : > { %497 = dma.done.wait (%p588_p8), %s129_s26, 128  }
  0x39   : > { %499 = vsyncadd (%p588_p8), %s129_s26, 4294967168  ;;  %vm157_vm0 = vcmask 1043456   ;;  %v153_v0 = vld [vmem:[%s132_s28] sm:$0xff]  ;;  %v529_v12 = vmov 1966171168   ;;  %v178_v14 = vlaneseq  ;;  %s341_s18 = sshll.u32 %s652_s24, 2 }
  0x3a   : > { %v155_v1 = vcombine.high %v153_v0, %v153_v0  ;;  %v158_v2 = vsel %vm157_vm0, %v153_v0, -inf  ;;  %v195_v3 = vsel %vm157_vm0, %v153_v0, 0.0  ;;  %v176_v13 = vunpack.c.l.s4 %v529_v12  ;;  %s150_s27 = scalar_lea.vmem [#allocation5], %s341_s18  ;;  %s349_s30 = sshll.u32 %s518_s9, 6 }
  0x3b   : > { %v159_v4 = vrot.slane %v158_v2, 4  ;;  %v196_v5 = vrot.slane %v195_v3, 4  ;;  %v179_v24 = vshrl.u32 %v178_v14, 7  ;;  %vm192_vm1 = vcmp.lt.s32.totalorder %v178_v14, 256  ;;  %s248_s29 = sshll.u32 %s150_s27, 4  ;;  %s667_s4 = scalar_lea.hbm %s715_s1, %s349_s30  ;;  %s662_s29 = int_to_ptr.vmem [resolvable:$true] %s248_s29 }
  0x3c   : > { %v165_v6 = vsel %vm157_vm0, %v155_v1, -inf  ;;  %v202_v7 = vsel %vm157_vm0, %v155_v1, 0.0  ;;  %v177_v23 = vunpack.c.0.s8 %v176_v13  ;;  %s232_s5 = scalar_lea.sflag [#allocation4], %s652_s24  ;;  %s444_s12 = scalar_lea.vmem %s662_s29, 64 }
  0x3d   : > { %v160_v8 = vmax.f32 %v158_v2, %v159_v4  ;;  %v166_v9 = vrot.slane %v165_v6, 4  ;;  %v197_v10 = vadd.f32 %v196_v5, %v195_v3  ;;  %v203_v11 = vrot.slane %v202_v7, 4  ;;  %p445_p8 = scmp.ne.s32.totalorder %s662_s29, %s444_s12  ;;  %p724_p9 = scmp.ne.s32.totalorder %s719_s19, 0 }
  0x3e   : > { %v180_v34 = vsub.s32 %v177_v23, %v179_v24  ;;  %s530_s9 = smov [#allocation5]  }
  0x3f   : > { %v161_v15 = vrot.slane %v160_v8, 2  ;;  %v167_v16 = vmax.f32 %v165_v6, %v166_v9  ;;  %v198_v17 = vrot.slane %v197_v10, 2  ;;  %v204_v18 = vadd.f32 %v203_v11, %v202_v7  ;;  %p446_p11 = pnand %p445_p8, %p724_p9  ;;  %s448_s13 = sshll.u32 %s530_s9, 4  ;;  %s449_s13 = int_to_ptr.vmem [resolvable:$false] %s448_s13 }
  0x40   : > { %s450_s15 = scalar_lea.vmem %s449_s13, 128  ;;  %p451_p7 = scmp.lt.s32.totalorder %s662_s29, %s449_s13 }
  0x41   : > { %v162_v19 = vmax.f32 %v160_v8, %v161_v15  ;;  %v168_v20 = vrot.slane %v167_v16, 2  ;;  %v199_v21 = vadd.f32 %v198_v17, %v197_v10  ;;  %v205_v22 = vrot.slane %v204_v18, 2  ;;  %p447_p0 = pneg %p446_p11  ;;  %p452_p13 = scmp.lt.s32.totalorder %s450_s15, %s444_s12 }
  0x43   : > { %v163_v25 = vrot.slane %v162_v19, 1  ;;  %v169_v26 = vmax.f32 %v167_v16, %v168_v20  ;;  %v200_v27 = vrot.slane %v199_v21, 1  ;;  %v206_v28 = vadd.f32 %v205_v22, %v204_v18  ;;  %p453_p3 = por %p452_p13, %p451_p7 }
  0x45   : > { %v164_v29 = vmax.f32 %v162_v19, %v163_v25  ;;  %v170_v30 = vrot.slane %v169_v26, 1  ;;  %v201_v31 = vadd.f32 %v200_v27, %v199_v21  ;;  %v207_v32 = vrot.slane %v206_v28, 1  ;;  %p454_p6 = pnand %p453_p3, %p447_p0 }
  0x47   : > { %v171_v33 = vmax.f32 %v169_v26, %v170_v30  ;;  %v208_v35 = vadd.f32 %v207_v32, %v206_v28  ;;  %v209_v36 = vmul.f32 0.25, %v201_v31 }
  0x49   : > { %v174_v37 = vcombine.low %v164_v29, %v171_v33  ;;  %v210_v38 = vmul.f32 0.25, %v208_v35 }
  0x4b   : > { %v181_v39 = vrot.slane %v174_v37, %v180_v34  ;;  %v213_v40 = vcombine.low %v209_v36, %v210_v38 }
  0x4d   : > { %v188_v41 = vrot.slane %v181_v39, %v180_v34  ;;  %v220_v42 = vrot.slane %v213_v40, %v180_v34 }
  0x4f   : > { %194 = vst.msk [vmem:[%s150_s27] ss:$2 sm:$0x3] %vm192_vm1, %v188_v41  ;;  %v227_v43 = vrot.slane %v220_v42, %v180_v34 }
  0x51   : > { %342 = vst.msk [vmem:[%s150_s27 + $0x1] ss:$2 sm:$0x3] %vm192_vm1, %v227_v43 }
  0x52   : > { %457 = shalt.err (!%p454_p6)
}
  0x53   : > { %s458_s16 = scalar_lea.hbm %s667_s4, 64  ;;  %s462_s23 = scalar_lea.hbm %s715_s1, 128 }
  0x54   : > { %p459_p4 = scmp.ne.s32.totalorder %s667_s4, %s458_s16  ;;  %p463_p1 = scmp.lt.u32.totalorder %s667_s4, %s715_s1 }
  0x55   : > { %p464_p2 = scmp.lt.u32.totalorder %s462_s23, %s458_s16  ;;  %p466_p8 = scmp.lt.u32.totalorder %s458_s16, %s667_s4 }
  0x56   : > { %p460_p10 = pnand %p459_p4, %p724_p9 }
  0x57   : > { %p465_p5 = por %p464_p2, %p463_p1 }
  0x58   : > { %p461_p12 = pneg %p460_p10 }
  0x59   : > { %p467_p11 = por %p466_p8, %p465_p5 }
  0x5b   : > { %p468_p0 = pnand %p467_p11, %p461_p12 }
  0x5d   : > { %471 = shalt.err (!%p468_p0)
}
  0x5e   : > { %352 = dma.vmem_to_hbm [thread:$0]  (%p724_p9), %s662_s29, 64, %s667_s4, %s232_s5  }
  0x5f PF: > { %s260_s26 = sand.u32 1, %s506_s6   ;;  %p725_p7 = scmp.ne.s32.totalorder %s720_s21, 0 }
  0x60   : > { %p726_p13 = scmp.ge.s32.totalorder %s526_s11, 2  ;;  %s261_s28 = scalar_lea.sflag [#allocation4], %s260_s26 }
  0x62   : > { %p359_p3 = pnand %p726_p13, %p725_p7 }
  0x64   : > { %501 = dma.done.wait (!%p359_p3), %s261_s28, 64  }
  0x65   : > { %503 = vsyncadd (!%p359_p3), %s261_s28, 4294967232  ;;  %s17_s11 = sadd.s32 1, %s526_s11   ;;  %s727_s6 = smov %s510_s7 }
  0x66   : > { %p14_p6 = scmp.ge.s32.totalorder %s17_s11, 4   ;;  %s728_s7 = smov %s514_s8 }
  0x67   : > { %s729_s8 = smov %s597_s20  ;;  %s730_s9 = smov %s522_s10 }
  0x68   : > { %s731_s10 = smov %s733_s14  ;;  %16 = sbr.rel (!%p14_p6) target bundleno = 6 (0x6), region = 70 }
  0x6f   :  { %266 = vsyncpa [#allocation3], 1 }
  0x70   :  { %268 = vsyncpa [#allocation3 + $0x1], 1 }
  0x71   :  { %269 = vsyncpa [#allocation4], 1 }
  0x72   :  { %271 = vsyncpa [#allocation4 + $0x1], 1 }

</bundles_post_ra>
